<compile_context>
chip_gen: v7x
topology: tpu7x:2x2x1
jax: 0.10.0
libtpu: 0.0.40
codegen_flags: <defaults>
</compile_context>

<pallas_src>
import jax
import jax.numpy as jnp
from jax.experimental import pallas as pl
from jax.experimental.pallas import tpu as pltpu


# ----------------------------------------------------------------------------
# Kernel: one (TB, M) batch tile of (lvec, rvec) -> (TB, C_pad) log-probs.
# ----------------------------------------------------------------------------
def similarity_kernel(l_ref, r_ref, wh_ref, bh_ref, wp_ref, bp_ref, out_ref):
    lvec = l_ref[...]                         # (TB, M)
    rvec = r_ref[...]                         # (TB, M)

    # distance features, fused into one lane-concat -> single MXU pass
    feats = jnp.concatenate([lvec * rvec, jnp.abs(lvec - rvec)], axis=-1)  # (TB, 2M)

    # wh(vec_dist) then sigmoid
    h = jnp.dot(feats, wh_ref[...], preferred_element_type=jnp.float32) + bh_ref[...]
    h = jax.nn.sigmoid(h)                     # (TB, H)

    # wp(h); padded columns carry bias=-1e30 so they vanish under softmax
    logits = jnp.dot(h, wp_ref[...], preferred_element_type=jnp.float32) + bp_ref[...]

    # log_softmax over the class axis (EUP exp/log, XLU reduces)
    m = jnp.max(logits, axis=-1, keepdims=True)
    z = logits - m
    lse = jnp.log(jnp.sum(jnp.exp(z), axis=-1, keepdims=True))
    out_ref[...] = (z - lse).astype(out_ref.dtype)


# ----------------------------------------------------------------------------
# One-time parameter layout (hoisted out of the per-call path).
# ----------------------------------------------------------------------------
def prepare_similarity_params(wh_w, wh_b, wp_w, wp_b, *, c_pad=128):
    """wh_w: (H, 2M) torch layout, wp_w: (C, H) torch layout."""
    H = wh_w.shape[0]
    C = wp_w.shape[0]
    assert C <= c_pad

    # wh: vec_dist @ wh_w.T ; concat order [mult, abs] matches kernel concat.
    wh_cat = jnp.transpose(wh_w).astype(jnp.float32)        # (2M, H)
    bh = wh_b.reshape(1, H).astype(jnp.float32)              # (1, H)

    # wp: pad the class axis to a lane-dense width; pad bias = -1e30 so the
    # padded logits are ignored by max/exp-sum in the kernel's log_softmax.
    wp_t = jnp.transpose(wp_w).astype(jnp.float32)            # (H, C)
    wp_pad = jnp.zeros((H, c_pad), jnp.float32).at[:, :C].set(wp_t)
    bp_pad = jnp.full((1, c_pad), -1e30, jnp.float32).at[:, :C].set(
        wp_b.reshape(1, C).astype(jnp.float32))
    return wh_cat, bh, wp_pad, bp_pad, C


# ----------------------------------------------------------------------------
# Batched forward: many (lvec, rvec) pairs per pallas_call.
# ----------------------------------------------------------------------------
def similarity_forward(lvec, rvec, wh_cat, bh, wp_pad, bp_pad, num_classes,
                       *, tile_rows=128):
    B, M = lvec.shape
    H = wh_cat.shape[1]
    CP = wp_pad.shape[1]

    # Pad batch to a multiple of the tile (zero rows are harmless; sliced off).
    n_tiles = pl.cdiv(B, tile_rows)
    Bp = n_tiles * tile_rows
    if Bp != B:
        pad = Bp - B
        lvec = jnp.pad(lvec, ((0, pad), (0, 0)))
        rvec = jnp.pad(rvec, ((0, pad), (0, 0)))

    out = pl.pallas_call(
        similarity_kernel,
        out_shape=jax.ShapeDtypeStruct((Bp, CP), jnp.float32),
        grid=(n_tiles,),
        in_specs=[
            pl.BlockSpec((tile_rows, M), lambda i: (i, 0)),   # lvec tile
            pl.BlockSpec((tile_rows, M), lambda i: (i, 0)),   # rvec tile
            pl.BlockSpec((2 * M, H), lambda i: (0, 0)),       # wh (resident)
            pl.BlockSpec((1, H), lambda i: (0, 0)),           # bh (resident)
            pl.BlockSpec((H, CP), lambda i: (0, 0)),          # wp padded (resident)
            pl.BlockSpec((1, CP), lambda i: (0, 0)),          # bp padded (resident)
        ],
        out_specs=pl.BlockSpec((tile_rows, CP), lambda i: (i, 0)),
        compiler_params=pltpu.CompilerParams(
            dimension_semantics=("parallel",)),
    )(lvec, rvec, wh_cat, bh, wp_pad, bp_pad)

    return out[:B, :num_classes]


if __name__ == "__main__":
    # Many node-pairs per call (this is the point of the batched kernel);
    # per-pair feature sizes match the module defaults.
    B = 300            # not a multiple of the 128-row tile -> exercises padding
    mem_dim = 32
    hidden_dim = 16
    num_classes = 5

    key = jax.random.PRNGKey(0)
    k_l, k_r, k_whw, k_whb, k_wpw, k_wpb = jax.random.split(key, 6)

    lvec = jax.random.normal(k_l, (B, mem_dim), dtype=jnp.float32)
    rvec = jax.random.normal(k_r, (B, mem_dim), dtype=jnp.float32)

    # nn.Linear-style deterministic init: U(-1/sqrt(fan_in), 1/sqrt(fan_in))
    bound_h = 1.0 / jnp.sqrt(2.0 * mem_dim)
    wh_w = jax.random.uniform(k_whw, (hidden_dim, 2 * mem_dim),
                              minval=-bound_h, maxval=bound_h, dtype=jnp.float32)
    wh_b = jax.random.uniform(k_whb, (hidden_dim,),
                              minval=-bound_h, maxval=bound_h, dtype=jnp.float32)
    bound_p = 1.0 / jnp.sqrt(float(hidden_dim))
    wp_w = jax.random.uniform(k_wpw, (num_classes, hidden_dim),
                              minval=-bound_p, maxval=bound_p, dtype=jnp.float32)
    wp_b = jax.random.uniform(k_wpb, (num_classes,),
                              minval=-bound_p, maxval=bound_p, dtype=jnp.float32)

    # One-time parameter layout (outside the hot call path).
    wh_cat, bh, wp_pad, bp_pad, C = prepare_similarity_params(
        wh_w, wh_b, wp_w, wp_b)

    out = similarity_forward(lvec, rvec, wh_cat, bh, wp_pad, bp_pad, C)
    jax.block_until_ready(out)

    # sanity check vs pure-JAX reference of the original module math
    vec_dist = jnp.concatenate([lvec * rvec, jnp.abs(lvec - rvec)], axis=1)
    ref = jax.nn.log_softmax(
        jax.nn.sigmoid(vec_dist @ wh_w.T + wh_b) @ wp_w.T + wp_b, axis=1)
    assert out.shape == (B, num_classes)
    assert jnp.allclose(out, ref, atol=1e-5, rtol=1e-5), "mismatch vs reference"

    print("KERNEL_OK")
</pallas_src>

<mosaic_0001>
module attributes {stable_mosaic.version = 11 : i64} {
  func.func @similarity_kernel(%arg0: i32, %arg1: memref<128x32xf32, #tpu.memory_space<vmem>>, %arg2: memref<128x32xf32, #tpu.memory_space<vmem>>, %arg3: memref<64x16xf32, #tpu.memory_space<vmem>>, %arg4: memref<1x16xf32, #tpu.memory_space<vmem>>, %arg5: memref<16x128xf32, #tpu.memory_space<vmem>>, %arg6: memref<1x128xf32, #tpu.memory_space<vmem>>, %arg7: memref<128x128xf32, #tpu.memory_space<vmem>>) attributes {dimension_semantics = [#tpu.dimension_semantics<parallel>], iteration_bounds = array<i64: 3>, scalar_prefetch = 0 : i64, scratch_operands = 0 : i64, tpu.core_type = #tpu.core_type<tc>, window_params = [{transform_indices = @transform_0, window_bounds = array<i64: 128, 32>}, {transform_indices = @transform_1, window_bounds = array<i64: 128, 32>}, {pipeline_mode = #tpu.pipeline_mode<synchronous>, transform_indices = @transform_2, window_bounds = array<i64: 64, 16>}, {pipeline_mode = #tpu.pipeline_mode<synchronous>, transform_indices = @transform_3, window_bounds = array<i64: 1, 16>}, {pipeline_mode = #tpu.pipeline_mode<synchronous>, transform_indices = @transform_4, window_bounds = array<i64: 16, 128>}, {pipeline_mode = #tpu.pipeline_mode<synchronous>, transform_indices = @transform_5, window_bounds = array<i64: 1, 128>}, {transform_indices = @transform_6, window_bounds = array<i64: 128, 128>}]} {
    %c0 = arith.constant 0 : index
    %c0_0 = arith.constant 0 : index
    %0 = vector.load %arg1[%c0, %c0_0] : memref<128x32xf32, #tpu.memory_space<vmem>>, vector<128x32xf32>
    %c0_1 = arith.constant 0 : index
    %c0_2 = arith.constant 0 : index
    %1 = vector.load %arg2[%c0_1, %c0_2] : memref<128x32xf32, #tpu.memory_space<vmem>>, vector<128x32xf32>
    %2 = arith.mulf %0, %1 : vector<128x32xf32>
    %3 = arith.subf %0, %1 : vector<128x32xf32>
    %4 = math.absf %3 : vector<128x32xf32>
    %5 = tpu.concatenate %2, %4 in 1 : vector<128x32xf32>, vector<128x32xf32> -> vector<128x64xf32>
    %c0_3 = arith.constant 0 : index
    %c0_4 = arith.constant 0 : index
    %6 = vector.load %arg3[%c0_3, %c0_4] : memref<64x16xf32, #tpu.memory_space<vmem>>, vector<64x16xf32>
    %cst = arith.constant dense<0.000000e+00> : vector<128x16xf32>
    %7 = tpu.matmul %5, %6, %cst {dimension_numbers = #tpu.dot_dimension_numbers<[1], [0], [0], [1], [0, 0, 1, 1], [], []>} : vector<128x64xf32>, vector<64x16xf32>, vector<128x16xf32> -> vector<128x16xf32>
    %c0_5 = arith.constant 0 : index
    %c0_6 = arith.constant 0 : index
    %8 = vector.load %arg4[%c0_5, %c0_6] : memref<1x16xf32, #tpu.memory_space<vmem>>, vector<1x16xf32>
    %9 = vector.broadcast %8 : vector<1x16xf32> to vector<128x16xf32>
    %10 = arith.addf %7, %9 : vector<128x16xf32>
    %11 = arith.negf %10 : vector<128x16xf32>
    %12 = math.exp %11 : vector<128x16xf32>
    %cst_7 = arith.constant 1.000000e+00 : f32
    %13 = vector.broadcast %cst_7 : f32 to vector<128x16xf32>
    %14 = arith.addf %13, %12 : vector<128x16xf32>
    %15 = arith.divf %13, %14 : vector<128x16xf32>
    %c0_8 = arith.constant 0 : index
    %c0_9 = arith.constant 0 : index
    %16 = vector.load %arg5[%c0_8, %c0_9] : memref<16x128xf32, #tpu.memory_space<vmem>>, vector<16x128xf32>
    %cst_10 = arith.constant dense<0.000000e+00> : vector<128x128xf32>
    %17 = tpu.matmul %15, %16, %cst_10 {dimension_numbers = #tpu.dot_dimension_numbers<[1], [0], [0], [1], [0, 0, 1, 1], [], []>} : vector<128x16xf32>, vector<16x128xf32>, vector<128x128xf32> -> vector<128x128xf32>
    %c0_11 = arith.constant 0 : index
    %c0_12 = arith.constant 0 : index
    %18 = vector.load %arg6[%c0_11, %c0_12] : memref<1x128xf32, #tpu.memory_space<vmem>>, vector<1x128xf32>
    %19 = vector.broadcast %18 : vector<1x128xf32> to vector<128x128xf32>
    %20 = arith.addf %17, %19 : vector<128x128xf32>
    %cst_13 = arith.constant dense<0xFF800000> : vector<128xf32>
    %21 = vector.multi_reduction <maximumf>, %20, %cst_13 [1] : vector<128x128xf32> to vector<128xf32>
    %22 = vector.shape_cast %21 : vector<128xf32> to vector<128x1xf32>
    %23 = vector.broadcast %22 : vector<128x1xf32> to vector<128x128xf32>
    %24 = arith.subf %20, %23 : vector<128x128xf32>
    %25 = math.exp %24 : vector<128x128xf32>
    %cst_14 = arith.constant dense<0.000000e+00> : vector<128xf32>
    %26 = vector.multi_reduction <add>, %25, %cst_14 [1] : vector<128x128xf32> to vector<128xf32>
    %27 = vector.shape_cast %26 : vector<128xf32> to vector<128x1xf32>
    %28 = math.log %27 : vector<128x1xf32>
    %29 = vector.broadcast %28 : vector<128x1xf32> to vector<128x128xf32>
    %30 = arith.subf %24, %29 : vector<128x128xf32>
    %c0_15 = arith.constant 0 : index
    %c0_16 = arith.constant 0 : index
    %31 = vector.load %arg7[%c0_15, %c0_16] : memref<128x128xf32, #tpu.memory_space<vmem>>, vector<128x128xf32>
    tpu.vector_store %arg7[%c0_15, %c0_16], %30 {strides = array<i32>} : memref<128x128xf32, #tpu.memory_space<vmem>>, vector<128x128xf32>,
    return
  }
  func.func @transform_0(%arg0: i32) -> (i32, i32) {
    %c0_i32 = arith.constant 0 : i32
    %c0_i32_0 = arith.constant 0 : i32
    return %arg0, %c0_i32 : i32, i32
  }
  func.func @transform_1(%arg0: i32) -> (i32, i32) {
    %c0_i32 = arith.constant 0 : i32
    %c0_i32_0 = arith.constant 0 : i32
    return %arg0, %c0_i32 : i32, i32
  }
  func.func @transform_2(%arg0: i32) -> (i32, i32) {
    %c0_i32 = arith.constant 0 : i32
    %c0_i32_0 = arith.constant 0 : i32
    %c0_i32_1 = arith.constant 0 : i32
    return %c0_i32, %c0_i32_0 : i32, i32
  }
  func.func @transform_3(%arg0: i32) -> (i32, i32) {
    %c0_i32 = arith.constant 0 : i32
    %c0_i32_0 = arith.constant 0 : i32
    %c0_i32_1 = arith.constant 0 : i32
    return %c0_i32, %c0_i32_0 : i32, i32
  }
  func.func @transform_4(%arg0: i32) -> (i32, i32) {
    %c0_i32 = arith.constant 0 : i32
    %c0_i32_0 = arith.constant 0 : i32
    %c0_i32_1 = arith.constant 0 : i32
    return %c0_i32, %c0_i32_0 : i32, i32
  }
  func.func @transform_5(%arg0: i32) -> (i32, i32) {
    %c0_i32 = arith.constant 0 : i32
    %c0_i32_0 = arith.constant 0 : i32
    %c0_i32_1 = arith.constant 0 : i32
    return %c0_i32, %c0_i32_0 : i32, i32
  }
  func.func @transform_6(%arg0: i32) -> (i32, i32) {
    %c0_i32 = arith.constant 0 : i32
    %c0_i32_0 = arith.constant 0 : i32
    return %arg0, %c0_i32 : i32, i32
  }
}

</mosaic_0001>

<bundles_post_ra>
// kernel: tpu_custom_call.1
= control target key start
LH: loop header
LB: loop body
LE: loop exit
PB: predicated region body
PF: predicated region fallthrough
CT: control target
= control target key end

     0   :  { %11 = vsyncpa [#allocation3], 0  ;;  %s2087_s0 = inlined_call_operand.vmem [shape: f32[384,32], index: 0, kind: input, shape index: {}]   ;;  %s2088_s1 = inlined_call_operand.vmem [shape: f32[384,32], index: 1, kind: input, shape index: {}]   ;;  %s2089_s2 = inlined_call_operand.vmem [shape: f32[64,16], index: 2, kind: input, shape index: {}]   ;;  %s2090_s3 = inlined_call_operand.vmem [shape: f32[1,16], index: 3, kind: input, shape index: {}]   ;;  %s2091_s4 = inlined_call_operand.vmem [shape: f32[16,128], index: 4, kind: input, shape index: {}]   ;;  %s2092_s5 = inlined_call_operand.vmem [shape: f32[1,128], index: 5, kind: input, shape index: {}]   ;;  %s2093_s6 = inlined_call_operand.hbm [shape: f32[384,128], index: 6, kind: output, shape index: {}]  }
   0x1   :  { %13 = vsyncpa [#allocation3 + $0x1], 0  ;;  %s1676_s21 = smov 0   ;;  %s1678_s22 = smov 0  }
   0x2   :  { %s1680_s23 = smov 0   ;;  %s1682_s24 = smov 0  }
   0x3 LB: > { %s1697_s25 = sadd.s32 4294967295, %s1635_s24   ;;  %s1208_s26 = sadd.s32 4294967294, %s1635_s24   ;;  %s1635_s24 = sphi %s1682_s24, %s2099_s24   ;;  %s1631_s23 = sphi %s1680_s23, %s2098_s23   ;;  %s1627_s22 = sphi %s1678_s22, %s2097_s22   ;;  %s1623_s21 = sphi %s1676_s21, %s2096_s21  }
   0x4   : > { %s1701_s27 = sadd.s32 1, %s1635_s24   ;;  %s162_s28 = sadd.s32 1, %s1631_s23 }
   0x5   : > { %s159_s29 = ssub.s32 %s1635_s24, %s1701_s27  ;;  %p172_p0 = scmp.ne.s32.totalorder %s1631_s23, %s1627_s22 }
   0x6   : > { %p160_p1 = scmp.eq.s32.totalorder %s159_s29, 0  ;;  %p173_p2 = scmp.eq.s32.totalorder %s1697_s25, 2 }
   0x7   : > { %p178_p3 = scmp.ne.s32.totalorder %s1627_s22, %s1623_s21  ;;  %p179_p4 = scmp.eq.s32.totalorder %s1208_s26, 2 }
   0x8   : > { %s1712_s30 = scalar_select %p160_p1, %s1631_s23, %s162_s28  }
   0x9   : > { %p1714_p5 = por %p173_p2, %p172_p0  ;;  %p1718_p6 = por %p179_p4, %p178_p3 }
   0xa   : > { %p1211_p7 = scmp.ge.s32.totalorder %s1635_s24, 1  ;;  %p227_p8 = scmp.lt.s32.totalorder %s1635_s24, 4 }
   0xc   : > { %p228_p9 = pnand %p1211_p7, %p227_p8 }
   0xd   : > { %s1213_s9 = sshll.u32 (!%p228_p9), %s1697_s25, 4  ;;  %v436_v0 = vld [vmem:[%s2089_s2] sm:$0xff] (!%p228_p9)  ;;  %v437_v1 = vld [vmem:[%s2089_s2 + $0x8] sm:$0xff] (!%p228_p9)  ;;  %v438_v2 = vld [vmem:[%s2089_s2 + $0x10] sm:$0xff] (!%p228_p9)  ;;  %s1637_s18 = smov (!%p228_p9), 32   ;;  %vm419_vm0 = vcmask (!%p228_p9), 261120  }
   0xe   : > { %231 = sbr.rel (%p228_p9) target bundleno = 969 (0x3c9), region = 44  ;;  %p263_p10 = scmp.lt.s32.totalorder (!%p228_p9), %s1213_s9, 47  ;;  %v1383_v3 = vpack.c.bf16 (!%p228_p9), %v437_v1, %v436_v0  ;;  %v439_v4 = vld [vmem:[%s2089_s2 + $0x18] sm:$0xff] (!%p228_p9)  ;;  %v440_v6 = vld [vmem:[%s2089_s2 + $0x20] sm:$0xff] (!%p228_p9)  ;;  %v441_v7 = vld [vmem:[%s2089_s2 + $0x28] sm:$0xff] (!%p228_p9)  ;;  %vm451_vm1 = vcmask (!%p228_p9), 523264  }
   0xf   : > { %v1387_v5 = vpack.c.bf16 (!%p228_p9), %v439_v4, %v438_v2  ;;  %v1391_v8 = vpack.c.bf16 (!%p228_p9), %v441_v7, %v440_v6  ;;  %v442_v9 = vld [vmem:[%s2089_s2 + $0x30] sm:$0xff] (!%p228_p9)  ;;  %v443_v10 = vld [vmem:[%s2089_s2 + $0x38] sm:$0xff] (!%p228_p9)  ;;  %vm750_vm2 = vcmask (!%p228_p9), 130048   ;;  %s259_s13 = sand.u32 (!%p228_p9), 1, %s1627_s22   ;;  %s1272_s16 = sshll.u32 (!%p228_p9), %s1697_s25, 11 }
  0x10   : > { %1384 = vmatprep.subr.bf16.mxu0 (!%p228_p9), %v1383_v3  ;;  %v1395_v19 = vpack.c.bf16 (!%p228_p9), %v443_v10, %v442_v9  ;;  %s1212_s14 = sshll.u32 (!%p228_p9), %s259_s13, 7  ;;  %s2037_s19 = scalar_lea.hbm (!%p228_p9), %s2093_s6, %s1272_s16 }
  0x11   : > { %1386 = vmatpush3.bf16.msra.mxu0 (!%p228_p9), %v1383_v3  ;;  %s2046_s25 = scalar_lea.sflag (!%p228_p9), [#allocation3], %s259_s13  ;;  %s1638_s26 = smov (!%p228_p9), [#allocation2]  }
  0x12   : > { %1388 = vmatprep.subr.bf16.mxu0 (!%p228_p9), %v1387_v5 }
  0x15   : > { %s2101_s9 = smov (!%p263_p10, %s1213_s9), 47  ;;  %1390 = vmatpush3.bf16.msra.mxu0 %v1387_v5 }
  0x16   : > { %s1214_s28 = sshll.u32 %s2101_s9, 3  ;;  %1392 = vmatprep.subr.bf16.mxu0 %v1391_v8 }
  0x17   : > { %s1752_s15 = scalar_lea.vmem %s2087_s0, %s1214_s28  ;;  %s1757_s9 = scalar_lea.vmem %s2088_s1, %s1214_s28 }
  0x18   : > { %v275_v11 = vld [vmem:[%s1752_s15] sm:$0xff]  ;;  %v277_v13 = vld [vmem:[%s1752_s15 + $0x10] sm:$0xff]  ;;  %v276_v17 = vld [vmem:[%s1752_s15 + $0x8] sm:$0xff]  ;;  %s1577_s28 = sshll.u32 %s1638_s26, 4  ;;  %s1578_s28 = int_to_ptr.vmem [resolvable:$false] %s1577_s28 }
  0x19   : > { %v291_v12 = vld [vmem:[%s1757_s9] sm:$0xff]  ;;  %v293_v16 = vld [vmem:[%s1757_s9 + $0x10] sm:$0xff]  ;;  %v292_v18 = vld [vmem:[%s1757_s9 + $0x8] sm:$0xff]  ;;  %1394 = vmatpush3.bf16.msra.mxu0 %v1391_v8  ;;  %s1579_s29 = scalar_lea.vmem %s1578_s28, 4096 }
  0x1a   : > { %v323_v14 = vsub.f32 %v275_v11, %v291_v12  ;;  %v1762_v15 = vmul.f32 %v291_v12, %v275_v11  ;;  %v325_v20 = vsub.f32 %v277_v13, %v293_v16  ;;  %v1767_v21 = vmul.f32 %v293_v16, %v277_v13  ;;  %v278_v23 = vld [vmem:[%s1752_s15 + $0x18] sm:$0xff]  ;;  %v279_v25 = vld [vmem:[%s1752_s15 + $0x20] sm:$0xff]  ;;  %v280_v30 = vld [vmem:[%s1752_s15 + $0x28] sm:$0xff]  ;;  %1396 = vmatprep.subr.bf16.mxu0 %v1395_v19 }
  0x1b   : > { %v324_v22 = vsub.f32 %v276_v17, %v292_v18  ;;  %v294_v24 = vld [vmem:[%s1757_s9 + $0x18] sm:$0xff]  ;;  %v1772_v26 = vmul.f32 %v292_v18, %v276_v17  ;;  %v295_v29 = vld [vmem:[%s1757_s9 + $0x20] sm:$0xff]  ;;  %v296_v31 = vld [vmem:[%s1757_s9 + $0x28] sm:$0xff] }
  0x1c   : > { %v339_v27 = vand.u32 2147483647, %v323_v14  ;;  %v326_v28 = vsub.f32 %v278_v23, %v294_v24  ;;  %v1777_v32 = vmul.f32 %v294_v24, %v278_v23  ;;  %v341_v33 = vand.u32 2147483647, %v325_v20  ;;  %v281_v36 = vld [vmem:[%s1752_s15 + $0x30] sm:$0xff]  ;;  %v282_v42 = vld [vmem:[%s1752_s15 + $0x38] sm:$0xff] }
  0x1d   : > { %v340_v34 = vand.u32 2147483647, %v324_v22  ;;  %v327_v35 = vsub.f32 %v279_v25, %v295_v29  ;;  %v297_v37 = vld [vmem:[%s1757_s9 + $0x30] sm:$0xff]  ;;  %v1782_v38 = vmul.f32 %v295_v29, %v279_v25  ;;  %v1784_v39 = vmul.f32 %v296_v31, %v280_v30  ;;  %v298_v43 = vld [vmem:[%s1757_s9 + $0x38] sm:$0xff]  ;;  %v283_v45 = vld [vmem:[%s1752_s15 + $0x40] sm:$0xff]  ;;  %1398 = vmatpush3.bf16.msra.mxu0 %v1395_v19 }
  0x1e   : > { %371 = vrot.lane.b32.xlu0 %v339_v27, %s1637_s18  ;;  %375 = vrot.lane.b32.xlu1 %v341_v33, %s1637_s18  ;;  %v342_v40 = vand.u32 2147483647, %v326_v28  ;;  %v328_v41 = vsub.f32 %v280_v30, %v296_v31  ;;  %v1789_v44 = vmul.f32 %v297_v37, %v281_v36  ;;  %v1792_v46 = vmul.f32 %v298_v43, %v282_v42  ;;  %v299_v47 = vld [vmem:[%s1757_s9 + $0x40] sm:$0xff]  ;;  %v284_v48 = vld [vmem:[%s1752_s15 + $0x48] sm:$0xff] }
  0x1f   : > { %v300_v49 = vld [vmem:[%s1757_s9 + $0x48] sm:$0xff]  ;;  %v343_v50 = vand.u32 2147483647, %v327_v35  ;;  %v329_v51 = vsub.f32 %v281_v36, %v297_v37  ;;  %v1798_v52 = vmul.f32 %v299_v47, %v283_v45  ;;  %v330_v55 = vsub.f32 %v282_v42, %v298_v43  ;;  %v285_v56 = vld [vmem:[%s1752_s15 + $0x50] sm:$0xff]  ;;  %v286_v58 = vld [vmem:[%s1752_s15 + $0x58] sm:$0xff] }
  0x20   : > { %v1800_v53 = vmul.f32 %v300_v49, %v284_v48  ;;  %v344_v54 = vand.u32 2147483647, %v328_v41  ;;  %v301_v57 = vld [vmem:[%s1757_s9 + $0x50] sm:$0xff]  ;;  %v302_v59 = vld [vmem:[%s1757_s9 + $0x58] sm:$0xff]  ;;  %v331_v61 = vsub.f32 %v283_v45, %v299_v47  ;;  %v332_v1 = vsub.f32 %v284_v48, %v300_v49  ;;  %v287_v2 = vld [vmem:[%s1752_s15 + $0x60] sm:$0xff] }
  0x21   : > { %v345_v60 = vand.u32 2147483647, %v329_v51  ;;  %v1808_v62 = vmul.f32 %v301_v57, %v285_v56  ;;  %v1810_v63 = vmul.f32 %v302_v59, %v286_v58  ;;  %v346_v0 = vand.u32 2147483647, %v330_v55  ;;  %v303_v3 = vld [vmem:[%s1757_s9 + $0x60] sm:$0xff]  ;;  %v288_v4 = vld [vmem:[%s1752_s15 + $0x68] sm:$0xff] }
  0x22   : > { %373 = vrot.lane.b32.xlu0 %v340_v34, %s1637_s18  ;;  %377 = vrot.lane.b32.xlu1 %v342_v40, %s1637_s18  ;;  %v304_v5 = vld [vmem:[%s1757_s9 + $0x68] sm:$0xff]  ;;  %v347_v6 = vand.u32 2147483647, %v331_v61  ;;  %v333_v7 = vsub.f32 %v285_v56, %v301_v57  ;;  %v1818_v8 = vmul.f32 %v303_v3, %v287_v2  ;;  %v348_v10 = vand.u32 2147483647, %v332_v1  ;;  %v289_v12 = vld [vmem:[%s1752_s15 + $0x70] sm:$0xff] }
  0x23   : > { %v1820_v9 = vmul.f32 %v304_v5, %v288_v4  ;;  %v334_v11 = vsub.f32 %v286_v58, %v302_v59  ;;  %v305_v13 = vld [vmem:[%s1757_s9 + $0x70] sm:$0xff]  ;;  %v290_v14 = vld [vmem:[%s1752_s15 + $0x78] sm:$0xff]  ;;  %v335_v18 = vsub.f32 %v287_v2, %v303_v3  ;;  %v336_v23 = vsub.f32 %v288_v4, %v304_v5  ;;  %v742_v61 = vld [vmem:[%s2091_s4 + $0x8] sm:$0xff]  ;;  %s2003_s15 = scalar_lea.vmem [#allocation2], %s1212_s14 }
  0x24   : > { %v306_v16 = vld [vmem:[%s1757_s9 + $0x78] sm:$0xff]  ;;  %v349_v17 = vand.u32 2147483647, %v333_v7  ;;  %v321_v19 = vmul.f32 %v305_v13, %v289_v12  ;;  %v337_v25 = vsub.f32 %v289_v12, %v305_v13  ;;  %s1134_s17 = sshll.u32 %s2003_s15, 4  ;;  %s2039_s17 = int_to_ptr.vmem [resolvable:$true] %s1134_s17 }
  0x25   : > { %v1828_v20 = vmul.f32 %v306_v16, %v290_v14  ;;  %v350_v22 = vand.u32 2147483647, %v334_v11  ;;  %v351_v24 = vand.u32 2147483647, %v335_v18  ;;  %v352_v27 = vand.u32 2147483647, %v336_v23  ;;  %p1580_p0 = scmp.lt.s32.totalorder %s2039_s17, %s1578_s28 }
  0x26   : > { %379 = vrot.lane.b32.xlu0 %v343_v50, %s1637_s18  ;;  %381 = vrot.lane.b32.xlu1 %v344_v54, %s1637_s18  ;;  %v338_v28 = vsub.f32 %v290_v14, %v306_v16  ;;  %v353_v29 = vand.u32 2147483647, %v337_v25  ;;  %s1573_s20 = scalar_lea.vmem %s2039_s17, 2048 }
  0x27   : > { %p1574_p11 = scmp.ne.s32.totalorder %s2039_s17, %s1573_s20  ;;  %p1581_p1 = scmp.lt.s32.totalorder %s1579_s29, %s1573_s20 }
  0x28   : > { %v354_v30 = vand.u32 2147483647, %v338_v28 }
  0x29   : > { %p1575_p12 = pnand %p1574_p11, %p1714_p5  ;;  %p1582_p2 = por %p1581_p1, %p1580_p0 }
  0x2a   : > { %383 = vrot.lane.b32.xlu0 %v345_v60, %s1637_s18  ;;  %385 = vrot.lane.b32.xlu1 %v346_v0, %s1637_s18  ;;  %v741_v60 = vld [vmem:[%s2091_s4] sm:$0xff] }
  0x2b   : > { %p1576_p13 = pneg %p1575_p12 }
  0x2d   : > { %p1583_p3 = pnand %p1582_p2, %p1576_p13 }
  0x2e   : > { %387 = vrot.lane.b32.xlu0 %v347_v6, %s1637_s18  ;;  %389 = vrot.lane.b32.xlu1 %v348_v10, %s1637_s18 }
  0x32   : > { %391 = vrot.lane.b32.xlu0 %v349_v17, %s1637_s18  ;;  %393 = vrot.lane.b32.xlu1 %v350_v22, %s1637_s18 }
  0x36   : > { %395 = vrot.lane.b32.xlu0 %v351_v24, %s1637_s18  ;;  %397 = vrot.lane.b32.xlu1 %v352_v27, %s1637_s18 }
  0x3a   : > { %399 = vrot.lane.b32.xlu0 %v353_v29, %s1637_s18  ;;  %401 = vrot.lane.b32.xlu1 %v354_v30, %s1637_s18 }
  0x90   : > { %v372_v31 = vpop.permute.xlu0 %371  ;;  %v376_v34 = vpop.permute.xlu1 %375 }
  0x91   : > { %v420_v33 = vsel %vm419_vm0, %v1762_v15, %v372_v31  ;;  %v422_v35 = vsel %vm419_vm0, %v1767_v21, %v376_v34 }
  0x92   : > { %1331 = vmatprep.mubr.msk.f32.mxu0 %vm451_vm1, %v420_v33 }
  0x94   : > { %v374_v36 = vpop.permute.xlu0 %373  ;;  %v378_v40 = vpop.permute.xlu1 %377 }
  0x95   : > { %v421_v37 = vsel %vm419_vm0, %v1772_v26, %v374_v36  ;;  %v423_v41 = vsel %vm419_vm0, %v1777_v32, %v378_v40 }
  0x96   : > { %1332 = vmatmul.mubr.msk.f32.vlgmr.msra.gmra.mrb[0].mxu0 %vm451_vm1, %v421_v37 }
  0x97   : > { %1334 = vmatprep.mubr.msk.f32.mxu0 %vm451_vm1, %v422_v35 }
  0x98   : > { %v380_v42 = vpop.permute.xlu0 %379  ;;  %v382_v43 = vpop.permute.xlu1 %381 }
  0x99   : > { %v424_v15 = vsel %vm419_vm0, %v1782_v38, %v380_v42  ;;  %v425_v21 = vsel %vm419_vm0, %v1784_v39, %v382_v43 }
  0x9a   : > { %1335 = vmatmul.mubr.msk.f32.gmra.mrb[2].mxu0 %vm451_vm1, %v423_v41 }
  0x9b   : > { %1337 = vmatprep.mubr.msk.f32.mxu0 %vm451_vm1, %v424_v15 }
  0x9c   : > { %v384_v26 = vpop.permute.xlu0 %383  ;;  %v386_v47 = vpop.permute.xlu1 %385 }
  0x9d   : > { %v426_v45 = vsel %vm419_vm0, %v1789_v44, %v384_v26  ;;  %v427_v32 = vsel %vm419_vm0, %v1792_v46, %v386_v47 }
  0x9e   : > { %1338 = vmatmul.mubr.msk.f32.gmra.mrb[4].mxu0 %vm451_vm1, %v425_v21 }
  0x9f   : > { %1340 = vmatprep.mubr.msk.f32.mxu0 %vm451_vm1, %v426_v45 }
  0xa0   : > { %v388_v38 = vpop.permute.xlu0 %387  ;;  %v390_v49 = vpop.permute.xlu1 %389 }
  0xa1   : > { %v428_v48 = vsel %vm419_vm0, %v1798_v52, %v388_v38  ;;  %v429_v39 = vsel %vm419_vm0, %v1800_v53, %v390_v49 }
  0xa2   : > { %1341 = vmatmul.mubr.msk.f32.gmra.mrb[6].mxu0 %vm451_vm1, %v427_v32 }
  0xa3   : > { %1343 = vmatprep.mubr.msk.f32.mxu0 %vm451_vm1, %v428_v48 }
  0xa4   : > { %v392_v44 = vpop.permute.xlu0 %391  ;;  %v394_v51 = vpop.permute.xlu1 %393 }
  0xa5   : > { %v430_v50 = vsel %vm419_vm0, %v1808_v62, %v392_v44  ;;  %v431_v46 = vsel %vm419_vm0, %v1810_v63, %v394_v51  ;;  %v1399_v62 = vpack.c.bf16 %v742_v61, %v741_v60  ;;  %v1893_v63 = vld [vmem:[%s2090_s3] ss:$0 sm:$0xff] }
  0xa6   : > { %1344 = vmatmul.mubr.msk.f32.gmra.mrb[8].mxu0 %vm451_vm1, %v429_v39 }
  0xa7   : > { %1346 = vmatprep.mubr.msk.f32.mxu0 %vm451_vm1, %v430_v50  ;;  %1400 = vmatprep.subr.bf16.mxu1 %v1399_v62 }
  0xa8   : > { %v396_v52 = vpop.permute.xlu0 %395  ;;  %v398_v55 = vpop.permute.xlu1 %397  ;;  %1402 = vmatpush3.bf16.msra.mxu1 %v1399_v62 }
  0xa9   : > { %v432_v54 = vsel %vm419_vm0, %v1818_v8, %v396_v52  ;;  %v433_v53 = vsel %vm419_vm0, %v1820_v9, %v398_v55 }
  0xaa   : > { %1347 = vmatmul.mubr.msk.f32.gmra.mrb[10].mxu0 %vm451_vm1, %v431_v46 }
  0xab   : > { %1349 = vmatprep.mubr.msk.f32.mxu0 %vm451_vm1, %v432_v54 }
  0xac   : > { %v400_v56 = vpop.permute.xlu0 %399  ;;  %v402_v58 = vpop.permute.xlu1 %401 }
  0xad   : > { %v434_v57 = vsel %vm419_vm0, %v321_v19, %v400_v56  ;;  %v435_v59 = vsel %vm419_vm0, %v1828_v20, %v402_v58 }
  0xae   : > { %1350 = vmatmul.mubr.msk.f32.gmra.mrb[12].mxu0 %vm451_vm1, %v433_v53 }
  0xaf   : > { %1352 = vmatprep.mubr.msk.f32.mxu0 %vm451_vm1, %v434_v57 }
  0xb2   : > { %1353 = vmatmul.mubr.msk.f32.gmra.mrb[14].mxu0 %vm451_vm1, %v435_v59 }
 0x169   : > { %v1333_v0 = vpop.f32.mrb[0].mxu0 }
 0x16a   : > { %v572_v1 = vadd.f32 %v1333_v0, %v1893_v63  ;;  %v566_v2 = vpop.f32.mrb[1].mxu0 }
 0x16b   : > { %v567_v3 = vadd.f32 %v1893_v63, %v566_v2 }
 0x16c   : > { %v1235_v4 = vmul.f32 -1.442695, %v572_v1 }
 0x16d   : > { %v1234_v5 = vmul.f32 -1.442695, %v567_v3  ;;  %v1336_v6 = vpop.f32.mrb[2].mxu0 }
 0x16e   : > { %1445 = vpow2.f32 %v1235_v4  ;;  %v582_v7 = vadd.f32 %v1336_v6, %v1893_v63  ;;  %v576_v8 = vpop.f32.mrb[3].mxu0 }
 0x16f   : > { %1447 = vpow2.f32 %v1234_v5  ;;  %v577_v9 = vadd.f32 %v1893_v63, %v576_v8 }
 0x170   : > { %v1237_v10 = vmul.f32 -1.442695, %v582_v7 }
 0x171   : > { %v1236_v11 = vmul.f32 -1.442695, %v577_v9  ;;  %v1339_v12 = vpop.f32.mrb[4].mxu0 }
 0x172   : > { %1449 = vpow2.f32 %v1237_v10  ;;  %v592_v13 = vadd.f32 %v1339_v12, %v1893_v63  ;;  %v586_v14 = vpop.f32.mrb[5].mxu0 }
 0x173   : > { %1451 = vpow2.f32 %v1236_v11  ;;  %v587_v16 = vadd.f32 %v1893_v63, %v586_v14 }
 0x174   : > { %v1239_v17 = vmul.f32 -1.442695, %v592_v13 }
 0x175   : > { %v1238_v18 = vmul.f32 -1.442695, %v587_v16  ;;  %v1342_v19 = vpop.f32.mrb[6].mxu0 }
 0x176   : > { %1453 = vpow2.f32 %v1239_v17  ;;  %v602_v20 = vadd.f32 %v1342_v19, %v1893_v63  ;;  %v596_v22 = vpop.f32.mrb[7].mxu0 }
 0x177   : > { %1455 = vpow2.f32 %v1238_v18  ;;  %v597_v23 = vadd.f32 %v1893_v63, %v596_v22 }
 0x178   : > { %v1446_v24 = vpop.eup %1445  ;;  %v1241_v25 = vmul.f32 -1.442695, %v602_v20 }
 0x179   : > { %v1448_v27 = vpop.eup %1447  ;;  %v694_v28 = vadd.f32 1.0, %v1446_v24  ;;  %v1240_v29 = vmul.f32 -1.442695, %v597_v23  ;;  %v1345_v30 = vpop.f32.mrb[8].mxu0 }
 0x17a   : > { %v693_v31 = vadd.f32 1.0, %v1448_v27  ;;  %1457 = vpow2.f32 %v1241_v25  ;;  %v612_v33 = vadd.f32 %v1345_v30, %v1893_v63  ;;  %v606_v34 = vpop.f32.mrb[9].mxu0 }
 0x17b   : > { %1459 = vrcp.f32 %v694_v28  ;;  %v607_v35 = vadd.f32 %v1893_v63, %v606_v34 }
 0x17c   : > { %v1450_v36 = vpop.eup %1449  ;;  %1461 = vrcp.f32 %v693_v31  ;;  %v1243_v37 = vmul.f32 -1.442695, %v612_v33 }
 0x17d   : > { %v1452_v40 = vpop.eup %1451  ;;  %v696_v41 = vadd.f32 1.0, %v1450_v36  ;;  %1463 = vpow2.f32 %v1240_v29  ;;  %v1242_v42 = vmul.f32 -1.442695, %v607_v35  ;;  %v1348_v15 = vpop.f32.mrb[10].mxu0  ;;  %v1250_v36 = vld [vmem:[%s2092_s5] ss:$0 sm:$0xff] }
 0x17e   : > { %v695_v43 = vadd.f32 1.0, %v1452_v40  ;;  %1465 = vpow2.f32 %v1243_v37  ;;  %v622_v21 = vadd.f32 %v1348_v15, %v1893_v63  ;;  %v616_v26 = vpop.f32.mrb[11].mxu0 }
 0x17f   : > { %1467 = vrcp.f32 %v696_v41  ;;  %v617_v45 = vadd.f32 %v1893_v63, %v616_v26 }
 0x180   : > { %v1454_v47 = vpop.eup %1453  ;;  %1469 = vrcp.f32 %v695_v43  ;;  %v1245_v32 = vmul.f32 -1.442695, %v622_v21 }
 0x181   : > { %v1456_v38 = vpop.eup %1455  ;;  %v698_v48 = vadd.f32 1.0, %v1454_v47  ;;  %1471 = vpow2.f32 %v1242_v42  ;;  %v1244_v49 = vmul.f32 -1.442695, %v617_v45  ;;  %v1351_v39 = vpop.f32.mrb[12].mxu0 }
 0x182   : > { %v697_v44 = vadd.f32 1.0, %v1456_v38  ;;  %1473 = vpow2.f32 %v1245_v32  ;;  %v632_v50 = vadd.f32 %v1351_v39, %v1893_v63  ;;  %v626_v51 = vpop.f32.mrb[13].mxu0 }
 0x183   : > { %1475 = vrcp.f32 %v698_v48  ;;  %v627_v46 = vadd.f32 %v1893_v63, %v626_v51 }
 0x184   : > { %v1458_v52 = vpop.eup %1457  ;;  %1477 = vrcp.f32 %v697_v44  ;;  %v1247_v54 = vmul.f32 -1.442695, %v632_v50 }
 0x185   : > { %v1460_v55 = vpop.eup %1459  ;;  %v700_v53 = vadd.f32 1.0, %v1458_v52  ;;  %1479 = vpow2.f32 %v1244_v49  ;;  %v1246_v56 = vmul.f32 -1.442695, %v627_v46  ;;  %v1354_v57 = vpop.f32.mrb[14].mxu0 }
 0x186   : > { %v1462_v58 = vpop.eup %1461  ;;  %1481 = vpow2.f32 %v1247_v54  ;;  %v642_v59 = vadd.f32 %v1354_v57, %v1893_v63  ;;  %v636_v60 = vpop.f32.mrb[15].mxu0 }
 0x187   : > { %v1464_v61 = vpop.eup %1463  ;;  %v637_v62 = vadd.f32 %v1893_v63, %v636_v60  ;;  %1359 = vmatprep.mubr.msk.f32.mxu1 %vm750_vm2, %v1462_v58  ;;  %1483 = vpow2.f32 %v1246_v56 }
 0x188   : > { %v1466_v0 = vpop.eup %1465  ;;  %v699_v1 = vadd.f32 1.0, %v1464_v61  ;;  %v1249_v2 = vmul.f32 -1.442695, %v642_v59  ;;  %1360 = vmatmul.mubr.msk.f32.vlgmr.msra.gmra.mrb[0].mxu1 %vm750_vm2, %v1460_v55  ;;  %1485 = vrcp.f32 %v700_v53 }
 0x189   : > { %v1468_v3 = vpop.eup %1467  ;;  %v702_v4 = vadd.f32 1.0, %v1466_v0  ;;  %v1248_v5 = vmul.f32 -1.442695, %v637_v62 }
 0x18a   : > { %v1470_v6 = vpop.eup %1469  ;;  %1487 = vrcp.f32 %v699_v1 }
 0x18b   : > { %v1472_v7 = vpop.eup %1471  ;;  %1489 = vrcp.f32 %v702_v4  ;;  %1362 = vmatprep.mubr.msk.f32.mxu1 %vm750_vm2, %v1470_v6 }
 0x18c   : > { %v1474_v8 = vpop.eup %1473  ;;  %v701_v63 = vadd.f32 1.0, %v1472_v7  ;;  %1491 = vpow2.f32 %v1249_v2  ;;  %1363 = vmatmul.mubr.msk.f32.gmra.mrb[2].mxu1 %vm750_vm2, %v1468_v3 }
 0x18d   : > { %v1476_v9 = vpop.eup %1475  ;;  %v704_v10 = vadd.f32 1.0, %v1474_v8  ;;  %1493 = vpow2.f32 %v1248_v5 }
 0x18e   : > { %v1478_v11 = vpop.eup %1477  ;;  %1495 = vrcp.f32 %v701_v63 }
 0x18f   : > { %v1480_v12 = vpop.eup %1479  ;;  %1365 = vmatprep.mubr.msk.f32.mxu1 %vm750_vm2, %v1478_v11  ;;  %1497 = vrcp.f32 %v704_v10 }
 0x190   : > { %v1482_v13 = vpop.eup %1481  ;;  %v703_v14 = vadd.f32 1.0, %v1480_v12  ;;  %1366 = vmatmul.mubr.msk.f32.gmra.mrb[4].mxu1 %vm750_vm2, %v1476_v9 }
 0x191   : > { %v706_v16 = vadd.f32 1.0, %v1482_v13  ;;  %v1484_v17 = vpop.eup %1483 }
 0x192   : > { %1499 = vrcp.f32 %v703_v14  ;;  %v1486_v18 = vpop.eup %1485  ;;  %v705_v19 = vadd.f32 1.0, %v1484_v17 }
 0x193   : > { %1501 = vrcp.f32 %v706_v16 }
 0x194   : > { %v1488_v20 = vpop.eup %1487  ;;  %1503 = vrcp.f32 %v705_v19 }
 0x195   : > { %v1490_v22 = vpop.eup %1489  ;;  %1368 = vmatprep.mubr.msk.f32.mxu1 %vm750_vm2, %v1488_v20 }
 0x196   : > { %v1492_v23 = vpop.eup %1491  ;;  %1369 = vmatmul.mubr.msk.f32.gmra.mrb[6].mxu1 %vm750_vm2, %v1486_v18 }
 0x197   : > { %v1494_v24 = vpop.eup %1493  ;;  %v708_v25 = vadd.f32 1.0, %v1492_v23 }
 0x198   : > { %v1496_v27 = vpop.eup %1495  ;;  %v707_v28 = vadd.f32 1.0, %v1494_v24 }
 0x199   : > { %1505 = vrcp.f32 %v708_v25  ;;  %1371 = vmatprep.mubr.msk.f32.mxu1 %vm750_vm2, %v1496_v27  ;;  %v1498_v29 = vpop.eup %1497 }
 0x19a   : > { %1507 = vrcp.f32 %v707_v28  ;;  %1372 = vmatmul.mubr.msk.f32.gmra.mrb[8].mxu1 %vm750_vm2, %v1490_v22 }
 0x19c   : > { %v1500_v30 = vpop.eup %1499 }
 0x19d   : > { %1374 = vmatprep.mubr.msk.f32.mxu1 %vm750_vm2, %v1500_v30  ;;  %v1502_v31 = vpop.eup %1501 }
 0x19e   : > { %1375 = vmatmul.mubr.msk.f32.gmra.mrb[10].mxu1 %vm750_vm2, %v1498_v29  ;;  %v1504_v33 = vpop.eup %1503 }
 0x19f   : > { %1377 = vmatprep.mubr.msk.f32.mxu1 %vm750_vm2, %v1504_v33 }
 0x1a2   : > { %1378 = vmatmul.mubr.msk.f32.gmra.mrb[12].mxu1 %vm750_vm2, %v1502_v31 }
 0x1a3   : > { %v1506_v34 = vpop.eup %1505 }
 0x1a4   : > { %v1508_v35 = vpop.eup %1507 }
 0x1a5   : > { %1380 = vmatprep.mubr.msk.f32.mxu1 %vm750_vm2, %v1508_v35 }
 0x1a6   : > { %1381 = vmatmul.mubr.msk.f32.gmra.mrb[14].mxu1 %vm750_vm2, %v1506_v34 }
 0x25b   : > { %v1361_v37 = vpop.f32.mrb[0].mxu1 }
 0x25c   : > { %v871_v40 = vadd.f32 %v1361_v37, %v1250_v36  ;;  %v865_v41 = vpop.f32.mrb[1].mxu1 }
 0x25d   : > { %v866_v42 = vadd.f32 %v1250_v36, %v865_v41 }
 0x25e   : > { %946 = vmax.xlane.f32.xlu1 %v871_v40 }
 0x25f   : > { %v1364_v15 = vpop.f32.mrb[2].mxu1  ;;  %944 = vmax.xlane.f32.xlu0 %v866_v42 }
 0x260   : > { %v881_v43 = vadd.f32 %v1364_v15, %v1250_v36  ;;  %v875_v21 = vpop.f32.mrb[3].mxu1 }
 0x261   : > { %v876_v47 = vadd.f32 %v1250_v36, %v875_v21 }
 0x263   : > { %v1367_v26 = vpop.f32.mrb[4].mxu1  ;;  %950 = vmax.xlane.f32.xlu0 %v881_v43 }
 0x264   : > { %v885_v45 = vpop.f32.mrb[5].mxu1  ;;  %v891_v38 = vadd.f32 %v1367_v26, %v1250_v36 }
 0x265   : > { %v886_v32 = vadd.f32 %v1250_v36, %v885_v45 }
 0x267   : > { %952 = vmax.xlane.f32.xlu1 %v886_v32  ;;  %948 = vmax.xlane.f32.xlu0 %v876_v47 }
 0x269   : > { %v1370_v48 = vpop.f32.mrb[6].mxu1 }
 0x26a   : > { %v895_v49 = vpop.f32.mrb[7].mxu1  ;;  %v901_v44 = vadd.f32 %v1370_v48, %v1250_v36 }
 0x26b   : > { %v896_v39 = vadd.f32 %v1250_v36, %v895_v49  ;;  %954 = vmax.xlane.f32.xlu0 %v891_v38 }
 0x26d   : > { %v1373_v50 = vpop.f32.mrb[8].mxu1  ;;  %956 = vmax.xlane.f32.xlu1 %v896_v39 }
 0x26e   : > { %v905_v51 = vpop.f32.mrb[9].mxu1  ;;  %v911_v52 = vadd.f32 %v1373_v50, %v1250_v36 }
 0x26f   : > { %v906_v46 = vadd.f32 %v1250_v36, %v905_v51  ;;  %958 = vmax.xlane.f32.xlu0 %v901_v44 }
 0x271   : > { %v1376_v54 = vpop.f32.mrb[10].mxu1  ;;  %960 = vmax.xlane.f32.xlu1 %v906_v46 }
 0x272   : > { %v915_v55 = vpop.f32.mrb[11].mxu1  ;;  %v1930_v56 = vadd.f32 %v1376_v54, %v1250_v36 }
 0x273   : > { %v916_v53 = vadd.f32 %v1250_v36, %v915_v55  ;;  %962 = vmax.xlane.f32.xlu0 %v911_v52 }
 0x275   : > { %v1379_v57 = vpop.f32.mrb[12].mxu1  ;;  %964 = vmax.xlane.f32.xlu1 %v916_v53 }
 0x276   : > { %v925_v58 = vpop.f32.mrb[13].mxu1  ;;  %v1935_v60 = vadd.f32 %v1379_v57, %v1250_v36 }
 0x277   : > { %v1932_v59 = vadd.f32 %v1250_v36, %v925_v58  ;;  %966 = vmax.xlane.f32.xlu0 %v1930_v56 }
 0x279   : > { %v1382_v61 = vpop.f32.mrb[14].mxu1  ;;  %968 = vmax.xlane.f32.xlu1 %v1932_v59 }
 0x27a   : > { %v935_v62 = vpop.f32.mrb[15].mxu1  ;;  %v1941_v1 = vadd.f32 %v1382_v61, %v1250_v36 }
 0x27b   : > { %v1938_v0 = vadd.f32 %v1250_v36, %v935_v62  ;;  %970 = vmax.xlane.f32.xlu0 %v1935_v60 }
 0x27d   : > { %972 = vmax.xlane.f32.xlu1 %v1938_v0 }
 0x27f   : > { %974 = vmax.xlane.f32.xlu0 %v1941_v1 }
 0x2eb   : > { %v947_v2 = vpop.xlane.xlu1 %946 }
 0x2ec   : > { %v1945_v3 = vsub.f32 %v871_v40, %v947_v2  ;;  %v945_v4 = vpop.xlane.xlu0 %944 }
 0x2ed   : > { %v1947_v5 = vsub.f32 %v866_v42, %v945_v4 }
 0x2ee   : > { %v994_v6 = vmul.f32 1.442695, %v1945_v3 }
 0x2ef   : > { %v992_v7 = vmul.f32 1.442695, %v1947_v5 }
 0x2f0   : > { %1509 = vpow2.f32 %v994_v6  ;;  %v951_v8 = vpop.xlane.xlu0 %950 }
 0x2f1   : > { %1511 = vpow2.f32 %v992_v7  ;;  %v1951_v63 = vsub.f32 %v881_v43, %v951_v8 }
 0x2f3   : > { %v998_v9 = vmul.f32 1.442695, %v1951_v63 }
 0x2f4   : > { %v953_v10 = vpop.xlane.xlu1 %952  ;;  %v949_v11 = vpop.xlane.xlu0 %948 }
 0x2f5   : > { %1513 = vpow2.f32 %v998_v9  ;;  %v1954_v12 = vsub.f32 %v876_v47, %v949_v11  ;;  %v1956_v13 = vsub.f32 %v886_v32, %v953_v10 }
 0x2f7   : > { %v996_v14 = vmul.f32 1.442695, %v1954_v12  ;;  %v1000_v19 = vmul.f32 1.442695, %v1956_v13 }
 0x2f8   : > { %v955_v16 = vpop.xlane.xlu0 %954 }
 0x2f9   : > { %v1959_v17 = vsub.f32 %v891_v38, %v955_v16  ;;  %1515 = vpow2.f32 %v996_v14 }
 0x2fa   : > { %v1510_v18 = vpop.eup %1509  ;;  %v957_v20 = vpop.xlane.xlu1 %956 }
 0x2fb   : > { %v1512_v22 = vpop.eup %1511  ;;  %v1962_v23 = vsub.f32 %v896_v39, %v957_v20  ;;  %v1002_v24 = vmul.f32 1.442695, %v1959_v17  ;;  %1026 = vadd.xlane.f32.xlu0 %v1510_v18 }
 0x2fc   : > { %1024 = vadd.xlane.f32.xlu1 %v1512_v22  ;;  %v959_v25 = vpop.xlane.xlu0 %958 }
 0x2fd   : > { %1517 = vpow2.f32 %v1002_v24  ;;  %v1965_v27 = vsub.f32 %v901_v44, %v959_v25  ;;  %v1004_v28 = vmul.f32 1.442695, %v1962_v23 }
 0x2fe   : > { %1519 = vpow2.f32 %v1000_v19  ;;  %v961_v29 = vpop.xlane.xlu1 %960 }
 0x2ff   : > { %v1514_v30 = vpop.eup %1513  ;;  %v1968_v31 = vsub.f32 %v906_v46, %v961_v29  ;;  %v1006_v33 = vmul.f32 1.442695, %v1965_v27 }
 0x300   : > { %1030 = vadd.xlane.f32.xlu0 %v1514_v30  ;;  %v963_v34 = vpop.xlane.xlu0 %962 }
 0x301   : > { %1521 = vpow2.f32 %v1006_v33  ;;  %v1971_v35 = vsub.f32 %v911_v52, %v963_v34  ;;  %v1008_v36 = vmul.f32 1.442695, %v1968_v31 }
 0x302   : > { %1523 = vpow2.f32 %v1004_v28  ;;  %v965_v37 = vpop.xlane.xlu1 %964 }
 0x303   : > { %v1974_v40 = vsub.f32 %v916_v53, %v965_v37  ;;  %v1010_v41 = vmul.f32 1.442695, %v1971_v35  ;;  %v1516_v42 = vpop.eup %1515 }
 0x304   : > { %v967_v15 = vpop.xlane.xlu0 %966  ;;  %1028 = vadd.xlane.f32.xlu1 %v1516_v42 }
 0x305   : > { %1525 = vpow2.f32 %v1010_v41  ;;  %v1978_v43 = vsub.f32 %v1930_v56, %v967_v15  ;;  %v1012_v21 = vmul.f32 1.442695, %v1974_v40 }
 0x306   : > { %1527 = vpow2.f32 %v1008_v36  ;;  %v969_v26 = vpop.xlane.xlu1 %968 }
 0x307   : > { %v1518_v45 = vpop.eup %1517  ;;  %v1982_v47 = vsub.f32 %v1932_v59, %v969_v26  ;;  %v1014_v32 = vmul.f32 1.442695, %v1978_v43 }
 0x308   : > { %v1520_v38 = vpop.eup %1519  ;;  %1034 = vadd.xlane.f32.xlu0 %v1518_v45  ;;  %v971_v48 = vpop.xlane.xlu0 %970 }
 0x309   : > { %1529 = vpow2.f32 %v1014_v32  ;;  %1032 = vadd.xlane.f32.xlu1 %v1520_v38  ;;  %v1986_v49 = vsub.f32 %v1935_v60, %v971_v48  ;;  %v1016_v39 = vmul.f32 1.442695, %v1982_v47 }
 0x30a   : > { %1531 = vpow2.f32 %v1012_v21  ;;  %v973_v44 = vpop.xlane.xlu1 %972 }
 0x30b   : > { %v1522_v50 = vpop.eup %1521  ;;  %v1990_v51 = vsub.f32 %v1938_v0, %v973_v44  ;;  %v1018_v46 = vmul.f32 1.442695, %v1986_v49 }
 0x30c   : > { %v1524_v52 = vpop.eup %1523  ;;  %1038 = vadd.xlane.f32.xlu0 %v1522_v50  ;;  %v975_v54 = vpop.xlane.xlu0 %974 }
 0x30d   : > { %1533 = vpow2.f32 %v1018_v46  ;;  %1036 = vadd.xlane.f32.xlu1 %v1524_v52  ;;  %v1994_v55 = vsub.f32 %v1941_v1, %v975_v54  ;;  %v1020_v53 = vmul.f32 1.442695, %v1990_v51 }
 0x30e   : > { %1535 = vpow2.f32 %v1016_v39 }
 0x30f   : > { %v1526_v56 = vpop.eup %1525  ;;  %v1022_v57 = vmul.f32 1.442695, %v1994_v55 }
 0x310   : > { %v1528_v58 = vpop.eup %1527  ;;  %1042 = vadd.xlane.f32.xlu0 %v1526_v56 }
 0x311   : > { %1537 = vpow2.f32 %v1022_v57  ;;  %1040 = vadd.xlane.f32.xlu1 %v1528_v58 }
 0x312   : > { %1539 = vpow2.f32 %v1020_v53 }
 0x313   : > { %v1530_v59 = vpop.eup %1529 }
 0x314   : > { %v1532_v60 = vpop.eup %1531  ;;  %1046 = vadd.xlane.f32.xlu0 %v1530_v59 }
 0x315   : > { %1044 = vadd.xlane.f32.xlu1 %v1532_v60 }
 0x317   : > { %v1534_v61 = vpop.eup %1533 }
 0x318   : > { %v1536_v62 = vpop.eup %1535  ;;  %1050 = vadd.xlane.f32.xlu0 %v1534_v61 }
 0x319   : > { %1048 = vadd.xlane.f32.xlu1 %v1536_v62 }
 0x31b   : > { %v1538_v0 = vpop.eup %1537 }
 0x31c   : > { %v1540_v1 = vpop.eup %1539  ;;  %1054 = vadd.xlane.f32.xlu0 %v1538_v0 }
 0x31d   : > { %1052 = vadd.xlane.f32.xlu1 %v1540_v1 }
 0x388   : > { %v1027_v2 = vpop.xlane.xlu0 %1026 }
 0x389   : > { %1541 = vlog2.f32 %v1027_v2  ;;  %v1025_v4 = vpop.xlane.xlu1 %1024 }
 0x38a   : > { %1543 = vlog2.f32 %v1025_v4 }
 0x38d   : > { %v1031_v6 = vpop.xlane.xlu0 %1030 }
 0x38e   : > { %1545 = vlog2.f32 %v1031_v6 }
 0x391   : > { %v1029_v7 = vpop.xlane.xlu1 %1028 }
 0x392   : > { %1547 = vlog2.f32 %v1029_v7 }
 0x393   : > { %v1542_v8 = vpop.eup %1541 }
 0x394   : > { %v1544_v9 = vpop.eup %1543  ;;  %v1059_v10 = vmul.f32 0.6931472, %v1542_v8 }
 0x395   : > { %v1057_v11 = vmul.f32 0.6931472, %v1544_v9  ;;  %v1035_v14 = vpop.xlane.xlu0 %1034 }
 0x396   : > { %v1089_v16 = vsub.f32 %v1945_v3, %v1059_v10  ;;  %v1033_v18 = vpop.xlane.xlu1 %1032  ;;  %1549 = vlog2.f32 %v1035_v14 }
 0x397   : > { %v1088_v19 = vsub.f32 %v1947_v5, %v1057_v11  ;;  %1551 = vlog2.f32 %v1033_v18 }
 0x398   : > { %v1546_v20 = vpop.eup %1545  ;;  %1105 = vst [vmem:[%s2003_s15 + $0x8] sm:$0xff] %v1089_v16 }
 0x399   : > { %1104 = vst [vmem:[%s2003_s15] sm:$0xff] %v1088_v19  ;;  %v1063_v22 = vmul.f32 0.6931472, %v1546_v20  ;;  %v1039_v24 = vpop.xlane.xlu0 %1038 }
 0x39a   : > { %v1037_v25 = vpop.xlane.xlu1 %1036  ;;  %1553 = vlog2.f32 %v1039_v24 }
 0x39b   : > { %v1091_v3 = vsub.f32 %v1951_v63, %v1063_v22  ;;  %1555 = vlog2.f32 %v1037_v25 }
 0x39c   : > { %v1548_v28 = vpop.eup %1547 }
 0x39d   : > { %1107 = vst [vmem:[%s2003_s15 + $0x18] sm:$0xff] %v1091_v3  ;;  %v1043_v5 = vpop.xlane.xlu0 %1042  ;;  %v1061_v29 = vmul.f32 0.6931472, %v1548_v28 }
 0x39e   : > { %v1041_v30 = vpop.xlane.xlu1 %1040  ;;  %1557 = vlog2.f32 %v1043_v5 }
 0x39f   : > { %1559 = vlog2.f32 %v1041_v30  ;;  %v1090_v34 = vsub.f32 %v1954_v12, %v1061_v29 }
 0x3a0   : > { %v1550_v33 = vpop.eup %1549 }
 0x3a1   : > { %v1552_v36 = vpop.eup %1551  ;;  %v1067_v37 = vmul.f32 0.6931472, %v1550_v33  ;;  %v1047_v41 = vpop.xlane.xlu0 %1046  ;;  %1106 = vst [vmem:[%s2003_s15 + $0x10] sm:$0xff] %v1090_v34 }
 0x3a2   : > { %v1065_v42 = vmul.f32 0.6931472, %v1552_v36  ;;  %v1045_v15 = vpop.xlane.xlu1 %1044  ;;  %1561 = vlog2.f32 %v1047_v41 }
 0x3a3   : > { %v1093_v63 = vsub.f32 %v1959_v17, %v1067_v37  ;;  %1563 = vlog2.f32 %v1045_v15 }
 0x3a4   : > { %v1554_v21 = vpop.eup %1553  ;;  %v1092_v26 = vsub.f32 %v1956_v13, %v1065_v42 }
 0x3a5   : > { %v1556_v45 = vpop.eup %1555  ;;  %1109 = vst [vmem:[%s2003_s15 + $0x28] sm:$0xff] %v1093_v63  ;;  %v1071_v32 = vmul.f32 0.6931472, %v1554_v21  ;;  %v1051_v12 = vpop.xlane.xlu0 %1050 }
 0x3a6   : > { %1108 = vst [vmem:[%s2003_s15 + $0x20] sm:$0xff] %v1092_v26  ;;  %v1069_v38 = vmul.f32 0.6931472, %v1556_v45  ;;  %v1049_v48 = vpop.xlane.xlu1 %1048  ;;  %1565 = vlog2.f32 %v1051_v12 }
 0x3a7   : > { %v1095_v39 = vsub.f32 %v1965_v27, %v1071_v32  ;;  %1567 = vlog2.f32 %v1049_v48 }
 0x3a8   : > { %v1558_v44 = vpop.eup %1557  ;;  %v1094_v17 = vsub.f32 %v1962_v23, %v1069_v38 }
 0x3a9   : > { %v1560_v50 = vpop.eup %1559  ;;  %1111 = vst [vmem:[%s2003_s15 + $0x38] sm:$0xff] %v1095_v39  ;;  %v1075_v13 = vmul.f32 0.6931472, %v1558_v44  ;;  %v1055_v46 = vpop.xlane.xlu0 %1054 }
 0x3aa   : > { %1110 = vst [vmem:[%s2003_s15 + $0x30] sm:$0xff] %v1094_v17  ;;  %v1073_v52 = vmul.f32 0.6931472, %v1560_v50  ;;  %v1053_v54 = vpop.xlane.xlu1 %1052  ;;  %1569 = vlog2.f32 %v1055_v46 }
 0x3ab   : > { %v1097_v53 = vsub.f32 %v1971_v35, %v1075_v13  ;;  %1571 = vlog2.f32 %v1053_v54 }
 0x3ac   : > { %v1562_v27 = vpop.eup %1561  ;;  %v1096_v56 = vsub.f32 %v1968_v31, %v1073_v52 }
 0x3ad   : > { %v1564_v57 = vpop.eup %1563  ;;  %1113 = vst [vmem:[%s2003_s15 + $0x48] sm:$0xff] %v1097_v53  ;;  %v1079_v23 = vmul.f32 0.6931472, %v1562_v27 }
 0x3ae   : > { %1112 = vst [vmem:[%s2003_s15 + $0x40] sm:$0xff] %v1096_v56  ;;  %v1077_v58 = vmul.f32 0.6931472, %v1564_v57 }
 0x3af   : > { %v1099_v59 = vsub.f32 %v1978_v43, %v1079_v23 }
 0x3b0   : > { %v1566_v60 = vpop.eup %1565  ;;  %v1098_v61 = vsub.f32 %v1974_v40, %v1077_v58 }
 0x3b1   : > { %v1568_v62 = vpop.eup %1567  ;;  %1115 = vst [vmem:[%s2003_s15 + $0x58] sm:$0xff] %v1099_v59  ;;  %v1083_v35 = vmul.f32 0.6931472, %v1566_v60 }
 0x3b2   : > { %1114 = vst [vmem:[%s2003_s15 + $0x50] sm:$0xff] %v1098_v61  ;;  %v1081_v31 = vmul.f32 0.6931472, %v1568_v62 }
 0x3b3   : > { %v1101_v0 = vsub.f32 %v1986_v49, %v1083_v35 }
 0x3b4   : > { %v1570_v1 = vpop.eup %1569  ;;  %v1100_v2 = vsub.f32 %v1982_v47, %v1081_v31 }
 0x3b5   : > { %v1572_v43 = vpop.eup %1571  ;;  %1117 = vst [vmem:[%s2003_s15 + $0x68] sm:$0xff] %v1101_v0  ;;  %v1087_v4 = vmul.f32 0.6931472, %v1570_v1 }
 0x3b6   : > { %1116 = vst [vmem:[%s2003_s15 + $0x60] sm:$0xff] %v1100_v2  ;;  %v1085_v40 = vmul.f32 0.6931472, %v1572_v43 }
 0x3b7   : > { %v1103_v6 = vsub.f32 %v1994_v55, %v1087_v4 }
 0x3b8   : > { %v1102_v47 = vsub.f32 %v1990_v51, %v1085_v40 }
 0x3b9   : > { %1119 = vst [vmem:[%s2003_s15 + $0x78] sm:$0xff] %v1103_v6 }
 0x3ba   : > { %1118 = vst [vmem:[%s2003_s15 + $0x70] sm:$0xff] %v1102_v47 }
 0x3bb   : > { %1586 = shalt.err (!%p1583_p3)
}
 0x3bc   : > { %s1587_s10 = scalar_lea.hbm %s2037_s19, 2048  ;;  %s1591_s13 = scalar_lea.hbm %s2093_s6, 6144 }
 0x3bd   : > { %p1588_p4 = scmp.ne.s32.totalorder %s2037_s19, %s1587_s10  ;;  %p1592_p9 = scmp.lt.u32.totalorder %s2037_s19, %s2093_s6 }
 0x3be   : > { %p1593_p10 = scmp.lt.u32.totalorder %s1591_s13, %s1587_s10  ;;  %p1595_p12 = scmp.lt.u32.totalorder %s1587_s10, %s2037_s19 }
 0x3bf   : > { %p1589_p7 = pnand %p1588_p4, %p1714_p5 }
 0x3c0   : > { %p1594_p11 = por %p1593_p10, %p1592_p9 }
 0x3c1   : > { %p1590_p8 = pneg %p1589_p7 }
 0x3c2   : > { %p1596_p13 = por %p1595_p12, %p1594_p11 }
 0x3c4   : > { %p1597_p0 = pnand %p1596_p13, %p1590_p8 }
 0x3c6   : > { %1600 = shalt.err (!%p1597_p0)
}
 0x3c7   : > { %s1639_s16 = smov 128   ;;  %s1640_s9 = smov 8  }
 0x3c8   : > { %1403 = dma.vmem_to_hbm [thread:$0]  (%p1714_p5), %s2039_s17, 2048, %s2037_s19, %s2046_s25, %s1639_s16, %s1639_s16, %s1640_s9  }
 0x3c9 PF: > { %p1409_p1 = scmp.ge.s32.totalorder %s1635_s24, 2  ;;  %s1149_s18 = sand.u32 1, %s1623_s21  }
 0x3ca   : > { %s1150_s20 = scalar_lea.sflag [#allocation3], %s1149_s18 }
 0x3cb   : > { %p1406_p2 = pnand %p1409_p1, %p1718_p6 }
 0x3cd   : > { %1618 = dma.done.wait (!%p1406_p2), %s1150_s20, 2048  }
 0x3ce   : > { %1620 = vsyncadd (!%p1406_p2), %s1150_s20, 4294965248  ;;  %p16_p3 = scmp.ge.s32.totalorder %s1701_s27, 5   ;;  %s2096_s21 = smov %s1627_s22 }
 0x3cf   : > { %s2097_s22 = smov %s1631_s23  ;;  %s2098_s23 = smov %s1712_s30 }
 0x3d0   : > { %s2099_s24 = smov %s1701_s27  ;;  %18 = sbr.rel (!%p16_p3) target bundleno = 3 (0x3), region = 82 }
 0x3d7   :  { %1155 = vsyncpa [#allocation3], 1 }
 0x3d8   :  { %1157 = vsyncpa [#allocation3 + $0x1], 1 }

</bundles_post_ra>
